<compile_context>
chip_gen: v6e
topology: v6e:2x2x1
jax: 0.10.0
libtpu: 0.0.40
codegen_flags: <defaults>
</compile_context>

<pallas_src>
import jax
import jax.numpy as jnp
from jax.experimental import pallas as pl
from jax.experimental.pallas import tpu as pltpu

_LANES = 128


def _make_focal_kernel(alpha, gamma, has_weight, n_valid, rows_per_block,
                       blocks_per_split):
    def kernel(*refs):
        if has_weight:
            pred_ref, target_ref, weight_ref, loss_ref, pnum_ref = refs
        else:
            pred_ref, target_ref, loss_ref, pnum_ref = refs
            weight_ref = None

        c = pl.program_id(0)   # split axis (parallel across TCs on v7x)
        j = pl.program_id(1)   # reduction axis over row blocks

        @pl.when(j == 0)
        def _():
            loss_ref[...] = jnp.zeros_like(loss_ref)
            pnum_ref[...] = jnp.zeros_like(pnum_ref)

        p = pred_ref[...].astype(jnp.float32)      # (B, Tr, 128)
        t = target_ref[...].astype(jnp.float32)

        # Validity mask built from the *intended* (unclamped) block index: it
        # zeroes the ragged tail, any lane padding, and whole blocks that fall
        # past the end of the array on the second split.
        blk = c * blocks_per_split + j
        shape = p.shape
        row = jax.lax.broadcasted_iota(jnp.int32, shape, 1)
        lane = jax.lax.broadcasted_iota(jnp.int32, shape, 2)
        flat = (blk * rows_per_block + row) * _LANES + lane
        valid = flat < n_valid

        # gamma is normalized to a Python int when integral, so ** lowers to
        # integer_pow (VPU muls) instead of exp/log pow on the EUP.
        ploss = -t * ((1.0 - p) ** gamma) * jnp.log(p + 1e-10)
        nloss = -(1.0 - t) * (p ** gamma) * jnp.log(1.0 - p + 1e-10)
        if alpha >= 0:
            loss = alpha * ploss + (1.0 - alpha) * nloss
        else:
            loss = ploss + nloss
        if weight_ref is not None:
            loss = loss * weight_ref[...].astype(jnp.float32)

        loss = jnp.where(valid, loss, 0.0)
        pos = jnp.where(valid & (t >= 1.0), 1.0, 0.0)

        # Lane-wide accumulation: only a sublane-direction reduce per step;
        # the cross-lane reduce happens once, in the wrapper epilogue.
        loss_ref[...] += jnp.sum(loss, axis=1)
        pnum_ref[...] += jnp.sum(pos, axis=1)

    return kernel


def focal_loss(pred, target, weight=None, *, alpha=-1, gamma=2,
               target_block_bytes=1 << 20, num_splits=2):
    """Pallas implementation of FocalLoss.forward (returns a scalar)."""
    alpha = float(alpha)
    g = float(gamma)
    gamma = int(g) if g == int(g) else g   # keep pow on the integer path

    B = pred.shape[0]
    pred2 = pred.reshape(B, -1)
    target2 = target.reshape(B, -1)
    N = pred2.shape[1]

    # Only pad when N is not lane-aligned (so the reshape below stays a free
    # metadata op).  Padded elements are masked inside the kernel, so the pad
    # value is irrelevant.
    pad = (-N) % _LANES
    if pad:
        pred2 = jnp.pad(pred2, ((0, 0), (0, pad)))
        target2 = jnp.pad(target2, ((0, 0), (0, pad)))
    R = (N + pad) // _LANES

    pred3 = pred2.reshape(B, R, _LANES)          # native dtype, no upcast copy
    target3 = target2.reshape(B, R, _LANES)
    inputs = [pred3, target3]

    has_weight = weight is not None
    if has_weight:
        w2 = weight.reshape(B, -1)
        if pad:
            w2 = jnp.pad(w2, ((0, 0), (0, pad)))
        inputs.append(w2.reshape(B, R, _LANES))

    # Row-block size: ~1 MiB per input block (sized for the f32 working set),
    # a multiple of 8 sublanes.  3 inputs x 2 pipeline buffers stays well
    # under every chip's scoped-VMEM budget (v7x's 64 MiB included).
    bytes_per_row = B * _LANES * 4
    max_rows = max(8, (target_block_bytes // bytes_per_row) // 8 * 8)
    if R <= max_rows:
        tr = R
        nblocks = 1
    else:
        tr = max_rows
        nblocks = pl.cdiv(R, tr)
    bps = pl.cdiv(nblocks, num_splits)   # row blocks per split
    last_blk = nblocks - 1

    def in_map(c, j):
        # Clamp so the DMA window always stays inside the array; the kernel's
        # mask (built from the unclamped index) discards any duplicated data.
        return (0, jnp.minimum(c * bps + j, last_blk), 0)

    in_specs = [pl.BlockSpec((B, tr, _LANES), in_map) for _ in inputs]
    out_specs = [
        pl.BlockSpec((None, B, _LANES), lambda c, j: (c, 0, 0)),
        pl.BlockSpec((None, B, _LANES), lambda c, j: (c, 0, 0)),
    ]
    out_shape = (
        jax.ShapeDtypeStruct((num_splits, B, _LANES), jnp.float32),
        jax.ShapeDtypeStruct((num_splits, B, _LANES), jnp.float32),
    )

    kernel = _make_focal_kernel(alpha, gamma, has_weight, N, tr, bps)

    loss_parts, pnum_parts = pl.pallas_call(
        kernel,
        out_shape=out_shape,
        grid_spec=pltpu.PrefetchScalarGridSpec(
            num_scalar_prefetch=0,
            grid=(num_splits, bps),
            in_specs=in_specs,
            out_specs=out_specs,
        ),
        compiler_params=pltpu.CompilerParams(
            dimension_semantics=("parallel", "arbitrary"),
            vmem_limit_bytes=32 * 1024 * 1024,
        ),
    )(*inputs)

    # Tiny epilogue on (num_splits, B, 128) partials: cross-lane reduce,
    # per-batch normalize, mean.
    loss_b = jnp.sum(loss_parts, axis=(0, 2))
    pnum_b = jnp.sum(pnum_parts, axis=(0, 2))
    return jnp.mean(loss_b / jnp.maximum(pnum_b, 1.0))


def _focal_loss_ref(pred, target, weight=None, alpha=-1, gamma=2):
    pred = pred.astype(jnp.float32)
    target = target.astype(jnp.float32)
    ploss = -target * ((1.0 - pred) ** gamma) * jnp.log(pred + 1e-10)
    nloss = -(1.0 - target) * (pred ** gamma) * jnp.log(1.0 - pred + 1e-10)
    loss = alpha * ploss + (1.0 - alpha) * nloss if alpha >= 0 else ploss + nloss
    if weight is not None:
        loss = loss * weight
    B = target.shape[0]
    pnum = jnp.sum((target >= 1.0).reshape(B, -1), axis=1)
    loss = jnp.sum(loss.reshape(B, -1), axis=1) / jnp.maximum(pnum, 1.0)
    return jnp.mean(loss)


if __name__ == "__main__":
    key = jax.random.PRNGKey(0)
    k1, k2, k3 = jax.random.split(key, 3)

    # Lane-aligned case (N = C*H*W = 1024), no weight.
    B, C, H, W = 2, 4, 16, 16
    pred = jax.random.uniform(k1, (B, C, H, W), jnp.float32,
                              minval=1e-3, maxval=1.0 - 1e-3)
    target = (jax.random.uniform(k2, (B, C, H, W)) > 0.7).astype(jnp.float32)
    out = jax.block_until_ready(focal_loss(pred, target))
    ref = _focal_loss_ref(pred, target)
    assert jnp.allclose(out, ref, rtol=1e-5, atol=1e-5), (out, ref)

    # Ragged case (N = 3*10*10 = 300) with a weight map: exercises the
    # in-kernel mask and the optional-weight path.
    B2, C2, H2, W2 = 2, 3, 10, 10
    pred_r = jax.random.uniform(k3, (B2, C2, H2, W2), jnp.float32,
                                minval=1e-3, maxval=1.0 - 1e-3)
    target_r = (jax.random.uniform(k1, (B2, C2, H2, W2)) > 0.6).astype(jnp.float32)
    weight_r = jax.random.uniform(k2, (B2, C2, H2, W2), jnp.float32,
                                  minval=0.5, maxval=1.5)
    out_r = jax.block_until_ready(focal_loss(pred_r, target_r, weight_r))
    ref_r = _focal_loss_ref(pred_r, target_r, weight_r)
    assert jnp.allclose(out_r, ref_r, rtol=1e-5, atol=1e-5), (out_r, ref_r)

    print("KERNEL_OK")
</pallas_src>

<mosaic_0001>
module attributes {stable_mosaic.version = 11 : i64} {
  func.func @kernel(%arg0: i32, %arg1: i32, %arg2: memref<2x8x128xf32, #tpu.memory_space<vmem>>, %arg3: memref<2x8x128xf32, #tpu.memory_space<vmem>>, %arg4: memref<1x2x128xf32, #tpu.memory_space<vmem>>, %arg5: memref<1x2x128xf32, #tpu.memory_space<vmem>>) attributes {dimension_semantics = [#tpu.dimension_semantics<parallel>, #tpu.dimension_semantics<arbitrary>], iteration_bounds = array<i64: 2, 1>, scalar_prefetch = 0 : i64, scratch_operands = 0 : i64, tpu.core_type = #tpu.core_type<tc>, window_params = [{transform_indices = @transform_0, window_bounds = array<i64: 2, 8, 128>}, {transform_indices = @transform_1, window_bounds = array<i64: 2, 8, 128>}, {transform_indices = @transform_2, window_bounds = array<i64: 1, 2, 128>}, {transform_indices = @transform_3, window_bounds = array<i64: 1, 2, 128>}]} {
    %c0_i32 = arith.constant 0 : i32
    %0 = arith.cmpi eq, %arg1, %c0_i32 : i32
    %1 = arith.extui %0 : i1 to i32
    %c0_i32_0 = arith.constant 0 : i32
    %2 = arith.cmpi ne, %1, %c0_i32_0 : i32
    scf.if %2 {
      %cst_30 = arith.constant 0.000000e+00 : f32
      %62 = vector.broadcast %cst_30 : f32 to vector<2x128xf32>
      %c0_31 = arith.constant 0 : index
      %c0_32 = arith.constant 0 : index
      %c0_33 = arith.constant 0 : index
      %63 = vector.load %arg4[%c0_31, %c0_32, %c0_33] : memref<1x2x128xf32, #tpu.memory_space<vmem>>, vector<1x2x128xf32>
      %64 = vector.shape_cast %63 : vector<1x2x128xf32> to vector<2x128xf32>
      %65 = vector.shape_cast %62 : vector<2x128xf32> to vector<1x2x128xf32>
      tpu.vector_store %arg4[%c0_31, %c0_32, %c0_33], %65 {strides = array<i32>} : memref<1x2x128xf32, #tpu.memory_space<vmem>>, vector<1x2x128xf32>,
      %cst_34 = arith.constant 0.000000e+00 : f32
      %66 = vector.broadcast %cst_34 : f32 to vector<2x128xf32>
      %c0_35 = arith.constant 0 : index
      %c0_36 = arith.constant 0 : index
      %c0_37 = arith.constant 0 : index
      %67 = vector.load %arg5[%c0_35, %c0_36, %c0_37] : memref<1x2x128xf32, #tpu.memory_space<vmem>>, vector<1x2x128xf32>
      %68 = vector.shape_cast %67 : vector<1x2x128xf32> to vector<2x128xf32>
      %69 = vector.shape_cast %66 : vector<2x128xf32> to vector<1x2x128xf32>
      tpu.vector_store %arg5[%c0_35, %c0_36, %c0_37], %69 {strides = array<i32>} : memref<1x2x128xf32, #tpu.memory_space<vmem>>, vector<1x2x128xf32>,
    } else {
    }
    %c0 = arith.constant 0 : index
    %c0_1 = arith.constant 0 : index
    %c0_2 = arith.constant 0 : index
    %3 = vector.load %arg2[%c0, %c0_1, %c0_2] : memref<2x8x128xf32, #tpu.memory_space<vmem>>, vector<2x8x128xf32>
    %c0_3 = arith.constant 0 : index
    %c0_4 = arith.constant 0 : index
    %c0_5 = arith.constant 0 : index
    %4 = vector.load %arg3[%c0_3, %c0_4, %c0_5] : memref<2x8x128xf32, #tpu.memory_space<vmem>>, vector<2x8x128xf32>
    %c1_i32 = arith.constant 1 : i32
    %5 = arith.muli %arg0, %c1_i32 : i32
    %6 = arith.addi %5, %arg1 : i32
    %7 = tpu.iota {dimensions = array<i32: 1>} : vector<2x8x128xi32>
    %8 = tpu.iota {dimensions = array<i32: 2>} : vector<2x8x128xi32>
    %c8_i32 = arith.constant 8 : i32
    %9 = arith.muli %6, %c8_i32 : i32
    %10 = vector.broadcast %9 : i32 to vector<2x8x128xi32>
    %11 = arith.addi %10, %7 : vector<2x8x128xi32>
    %c128_i32 = arith.constant 128 : i32
    %12 = vector.broadcast %c128_i32 : i32 to vector<2x8x128xi32>
    %13 = arith.muli %11, %12 : vector<2x8x128xi32>
    %14 = arith.addi %13, %8 : vector<2x8x128xi32>
    %c1024_i32 = arith.constant 1024 : i32
    %15 = vector.broadcast %c1024_i32 : i32 to vector<2x8x128xi32>
    %16 = arith.cmpi slt, %14, %15 : vector<2x8x128xi32>
    %cst = arith.constant 0.000000e+00 : f32
    %17 = vector.broadcast %cst : f32 to vector<2x8x128xf32>
    %18 = arith.subf %17, %4 : vector<2x8x128xf32>
    %cst_6 = arith.constant 1.000000e+00 : f32
    %19 = vector.broadcast %cst_6 : f32 to vector<2x8x128xf32>
    %20 = arith.subf %19, %3 : vector<2x8x128xf32>
    %21 = arith.mulf %20, %20 : vector<2x8x128xf32>
    %22 = arith.mulf %18, %21 : vector<2x8x128xf32>
    %cst_7 = arith.constant 1.000000e-10 : f32
    %23 = vector.broadcast %cst_7 : f32 to vector<2x8x128xf32>
    %24 = arith.addf %3, %23 : vector<2x8x128xf32>
    %25 = math.log %24 : vector<2x8x128xf32>
    %26 = arith.mulf %22, %25 : vector<2x8x128xf32>
    %cst_8 = arith.constant 1.000000e+00 : f32
    %27 = vector.broadcast %cst_8 : f32 to vector<2x8x128xf32>
    %28 = arith.subf %27, %4 : vector<2x8x128xf32>
    %cst_9 = arith.constant 0.000000e+00 : f32
    %29 = vector.broadcast %cst_9 : f32 to vector<2x8x128xf32>
    %30 = arith.subf %29, %28 : vector<2x8x128xf32>
    %31 = arith.mulf %3, %3 : vector<2x8x128xf32>
    %32 = arith.mulf %30, %31 : vector<2x8x128xf32>
    %cst_10 = arith.constant 1.000000e+00 : f32
    %33 = vector.broadcast %cst_10 : f32 to vector<2x8x128xf32>
    %34 = arith.subf %33, %3 : vector<2x8x128xf32>
    %cst_11 = arith.constant 1.000000e-10 : f32
    %35 = vector.broadcast %cst_11 : f32 to vector<2x8x128xf32>
    %36 = arith.addf %34, %35 : vector<2x8x128xf32>
    %37 = math.log %36 : vector<2x8x128xf32>
    %38 = arith.mulf %32, %37 : vector<2x8x128xf32>
    %39 = arith.addf %26, %38 : vector<2x8x128xf32>
    %cst_12 = arith.constant 0.000000e+00 : f32
    %40 = vector.broadcast %cst_12 : f32 to vector<2x8x128xf32>
    %41 = arith.select %16, %39, %40 : vector<2x8x128xi1>, vector<2x8x128xf32>
    %cst_13 = arith.constant 1.000000e+00 : f32
    %42 = vector.broadcast %cst_13 : f32 to vector<2x8x128xf32>
    %43 = arith.cmpf oge, %4, %42 : vector<2x8x128xf32>
    %44 = arith.andi %16, %43 : vector<2x8x128xi1>
    %cst_14 = arith.constant 1.000000e+00 : f32
    %cst_15 = arith.constant 0.000000e+00 : f32
    %45 = vector.broadcast %cst_14 : f32 to vector<2x8x128xf32>
    %46 = vector.broadcast %cst_15 : f32 to vector<2x8x128xf32>
    %47 = arith.select %44, %45, %46 : vector<2x8x128xi1>, vector<2x8x128xf32>
    %c0_16 = arith.constant 0 : index
    %c0_17 = arith.constant 0 : index
    %c0_18 = arith.constant 0 : index
    %48 = vector.load %arg4[%c0_16, %c0_17, %c0_18] : memref<1x2x128xf32, #tpu.memory_space<vmem>>, vector<1x2x128xf32>
    %49 = vector.shape_cast %48 : vector<1x2x128xf32> to vector<2x128xf32>
    %cst_19 = arith.constant dense<0.000000e+00> : vector<2x128xf32>
    %50 = vector.multi_reduction <add>, %41, %cst_19 [1] : vector<2x8x128xf32> to vector<2x128xf32>
    %51 = arith.addf %49, %50 : vector<2x128xf32>
    %c0_20 = arith.constant 0 : index
    %c0_21 = arith.constant 0 : index
    %c0_22 = arith.constant 0 : index
    %52 = vector.load %arg4[%c0_20, %c0_21, %c0_22] : memref<1x2x128xf32, #tpu.memory_space<vmem>>, vector<1x2x128xf32>
    %53 = vector.shape_cast %52 : vector<1x2x128xf32> to vector<2x128xf32>
    %54 = vector.shape_cast %51 : vector<2x128xf32> to vector<1x2x128xf32>
    tpu.vector_store %arg4[%c0_20, %c0_21, %c0_22], %54 {strides = array<i32>} : memref<1x2x128xf32, #tpu.memory_space<vmem>>, vector<1x2x128xf32>,
    %c0_23 = arith.constant 0 : index
    %c0_24 = arith.constant 0 : index
    %c0_25 = arith.constant 0 : index
    %55 = vector.load %arg5[%c0_23, %c0_24, %c0_25] : memref<1x2x128xf32, #tpu.memory_space<vmem>>, vector<1x2x128xf32>
    %56 = vector.shape_cast %55 : vector<1x2x128xf32> to vector<2x128xf32>
    %cst_26 = arith.constant dense<0.000000e+00> : vector<2x128xf32>
    %57 = vector.multi_reduction <add>, %47, %cst_26 [1] : vector<2x8x128xf32> to vector<2x128xf32>
    %58 = arith.addf %56, %57 : vector<2x128xf32>
    %c0_27 = arith.constant 0 : index
    %c0_28 = arith.constant 0 : index
    %c0_29 = arith.constant 0 : index
    %59 = vector.load %arg5[%c0_27, %c0_28, %c0_29] : memref<1x2x128xf32, #tpu.memory_space<vmem>>, vector<1x2x128xf32>
    %60 = vector.shape_cast %59 : vector<1x2x128xf32> to vector<2x128xf32>
    %61 = vector.shape_cast %58 : vector<2x128xf32> to vector<1x2x128xf32>
    tpu.vector_store %arg5[%c0_27, %c0_28, %c0_29], %61 {strides = array<i32>} : memref<1x2x128xf32, #tpu.memory_space<vmem>>, vector<1x2x128xf32>,
    return
  }
  func.func @transform_0(%arg0: i32, %arg1: i32) -> (i32, i32, i32) {
    %c1_i32 = arith.constant 1 : i32
    %0 = arith.muli %arg0, %c1_i32 : i32
    %1 = arith.addi %0, %arg1 : i32
    %c0_i32 = arith.constant 0 : i32
    %2 = arith.minsi %1, %c0_i32 : i32
    %c0_i32_0 = arith.constant 0 : i32
    %c0_i32_1 = arith.constant 0 : i32
    %c0_i32_2 = arith.constant 0 : i32
    return %c0_i32_0, %2, %c0_i32_1 : i32, i32, i32
  }
  func.func @transform_1(%arg0: i32, %arg1: i32) -> (i32, i32, i32) {
    %c1_i32 = arith.constant 1 : i32
    %0 = arith.muli %arg0, %c1_i32 : i32
    %1 = arith.addi %0, %arg1 : i32
    %c0_i32 = arith.constant 0 : i32
    %2 = arith.minsi %1, %c0_i32 : i32
    %c0_i32_0 = arith.constant 0 : i32
    %c0_i32_1 = arith.constant 0 : i32
    %c0_i32_2 = arith.constant 0 : i32
    return %c0_i32_0, %2, %c0_i32_1 : i32, i32, i32
  }
  func.func @transform_2(%arg0: i32, %arg1: i32) -> (i32, i32, i32) {
    %c0_i32 = arith.constant 0 : i32
    %c0_i32_0 = arith.constant 0 : i32
    %c0_i32_1 = arith.constant 0 : i32
    return %arg0, %c0_i32, %c0_i32_0 : i32, i32, i32
  }
  func.func @transform_3(%arg0: i32, %arg1: i32) -> (i32, i32, i32) {
    %c0_i32 = arith.constant 0 : i32
    %c0_i32_0 = arith.constant 0 : i32
    %c0_i32_1 = arith.constant 0 : i32
    return %arg0, %c0_i32, %c0_i32_0 : i32, i32, i32
  }
}

</mosaic_0001>

<bundles_post_ra>
// kernel: tpu_custom_call.1
= control target key start
LH: loop header
LB: loop body
LE: loop exit
PB: predicated region body
PF: predicated region fallthrough
CT: control target
= control target key end

     0   :  { %9 = vsyncpa [#allocation3], 0  ;;  %s1128_s0 = inlined_call_operand.hbm [shape: f32[2,8,128], index: 0, kind: input, shape index: {}]   ;;  %s1129_s1 = inlined_call_operand.hbm [shape: f32[2,8,128], index: 1, kind: input, shape index: {}]   ;;  %s1130_s2 = inlined_call_operand.hbm [shape: f32[2,2,128], index: 2, kind: output, shape index: {0}]   ;;  %s1131_s3 = inlined_call_operand.hbm [shape: f32[2,2,128], index: 3, kind: output, shape index: {1}]  }
   0x1   :  { %11 = vsyncpa [#allocation3 + $0x1], 0 }
   0x2   :  { %12 = vsyncpa [#allocation6], 0 }
   0x3   :  { %14 = vsyncpa [#allocation6 + $0x1], 0 }
   0x4   :  { %15 = vsyncpa [#allocation4], 0 }
   0x5   :  { %17 = vsyncpa [#allocation4 + $0x1], 0 }
   0x6   :  { %18 = vsyncpa [#allocation9], 0 }
   0x7   :  { %20 = vsyncpa [#allocation9 + $0x1], 0  ;;  %s888_s12 = smov 0   ;;  %s890_s13 = smov 0  }
   0x8   :  { %s892_s14 = smov 0   ;;  %s894_s15 = smov 0  }
   0x9   :  { %s896_s16 = smov 0   ;;  %s898_s17 = smov 0  }
   0xa   :  { %s900_s18 = smov 0   ;;  %s902_s19 = smov 0  }
   0xb LB: > { %s541_s20 = sadd.s32 4294967295, %s859_s19   ;;  %s542_s21 = sadd.s32 4294967294, %s859_s19   ;;  %s859_s19 = sphi %s902_s19, %s26_s19   ;;  %s855_s18 = sphi %s900_s18, %s1150_s18   ;;  %s851_s17 = sphi %s898_s17, %s1149_s17   ;;  %s847_s16 = sphi %s896_s16, %s1118_s16   ;;  %s843_s15 = sphi %s894_s15, %s1148_s15   ;;  %s839_s14 = sphi %s892_s14, %s1147_s14   ;;  %s835_s13 = sphi %s890_s13, %s1146_s13   ;;  %s831_s12 = sphi %s888_s12, %s1145_s12  }
   0xc   : > { %s38_s22 = sadd.s32 1, %s855_s18  ;;  %p828_p1 = scmp.ne.s32.totalorder %s847_s16, 0 }
   0xd   : > { %p40_p0 = scmp.ge.s32.totalorder %s38_s22, 2  ;;  %p59_p2 = scmp.eq.s32.totalorder %s859_s19, 0 }
   0xe   : > { %p64_p3 = scmp.ne.s32.totalorder %s847_s16, %s843_s15  ;;  %p65_p5 = scmp.eq.s32.totalorder %s541_s20, 0 }
   0xf   : > { %s1152_s22 = smov (%p40_p0, %s38_s22), 0  ;;  %p934_p4 = por %p828_p1, %p59_p2 }
  0x10   : > { %p938_p6 = por %p65_p5, %p64_p3  ;;  %s106_s25 = ssub.s32 %s855_s18, %s1152_s22 }
  0x11   : > { %p107_p7 = scmp.eq.s32.totalorder %s106_s25, 0  ;;  %s109_s26 = sadd.s32 1, %s839_s14 }
  0x12   : > { %s1135_s24 = scalar_select %p938_p6, 1, 0 }
  0x13   : > { %s946_s27 = scalar_select %p107_p7, %s839_s14, %s109_s26  }
  0x14   : > { %p119_p8 = scmp.ne.s32.totalorder %s839_s14, %s835_s13  ;;  %p120_p9 = scmp.eq.s32.totalorder %s541_s20, 1 }
  0x15   : > { %p125_p10 = scmp.ne.s32.totalorder %s835_s13, %s831_s12  ;;  %p126_p11 = scmp.eq.s32.totalorder %s542_s21, 1 }
  0x16   : > { %p952_p12 = por %p120_p9, %p119_p8  ;;  %p583_p1 = scmp.lt.s32.totalorder %s859_s19, 2 }
  0x17   : > { %p957_p0 = por %p126_p11, %p125_p10  ;;  %s861_s30 = smov [#allocation2]  }
  0x18   : > { %s1136_s28 = scalar_select %p952_p12, 1, 0 }
  0x19   : > { %s1137_s29 = scalar_select %p957_p0, 1, 0 }
  0x1a   : > { %s185_s4 = sshll.u32 %s861_s30, 4  ;;  %p964_p2 = pnand %p583_p1, %p934_p4  ;;  %s186_s4 = int_to_ptr.vmem [resolvable:$true] %s185_s4 }
  0x1b   : > { %s668_s8 = scalar_lea.hbm %s1128_s0, 256 }
  0x1c   : > { %p669_p3 = scmp.ne.s32.totalorder %s1128_s0, %s668_s8  ;;  %p670_p5 = pneg %p964_p2 }
  0x1d   : > { %p675_p8 = scmp.lt.s32.totalorder %s668_s8, %s668_s8 }
  0x1e   : > { %p671_p7 = pnand %p670_p5, %p669_p3 }
  0x20   : > { %p672_p4 = pneg %p671_p7 }
  0x22   : > { %p677_p9 = pnand %p675_p8, %p672_p4 }
  0x24   : > { %680 = shalt.err (!%p677_p9)
}
  0x25   : > { %s681_s11 = scalar_lea.vmem %s186_s4, 256  ;;  %s688_s15 = scalar_lea.vmem %s186_s4, 512 }
  0x26   : > { %p682_p10 = scmp.ne.s32.totalorder %s186_s4, %s681_s11  ;;  %p689_p13 = scmp.lt.s32.totalorder %s186_s4, %s186_s4 }
  0x27   : > { %p690_p0 = scmp.lt.s32.totalorder %s688_s15, %s681_s11 }
  0x28   : > { %p684_p11 = pnand %p682_p10, %p670_p5 }
  0x29   : > { %p691_p12 = por %p690_p0, %p689_p13 }
  0x2a   : > { %p685_p1 = pneg %p684_p11 }
  0x2c   : > { %p692_p6 = pnand %p691_p12, %p685_p1 }
  0x2e   : > { %695 = shalt.err (!%p692_p6)
}
  0x2f   : > { %s862_s20 = smov 128   ;;  %s863_s21 = smov 8  }
  0x30   : > { %572 = dma.hbm_to_vmem [thread:$0]  (!%p964_p2), %s1128_s0, 256, %s186_s4, [#allocation3], %s862_s20, %s862_s20, %s863_s21  }
  0x31   : > { %p549_p3 = scmp.ge.s32.totalorder %s859_s19, 1  ;;  %p216_p7 = scmp.lt.s32.totalorder %s859_s19, 3 }
  0x32   : > { %s864_s30 = smov [#allocation5]   ;;  %s696_s9 = scalar_lea.hbm %s1129_s1, 256 }
  0x33   : > { %p989_p4 = pnand %p549_p3, %p216_p7  ;;  %s208_s6 = sshll.u32 %s864_s30, 4  ;;  %s209_s6 = int_to_ptr.vmem [resolvable:$true] %s208_s6 }
  0x34   : > { %p697_p6 = scmp.ne.s32.totalorder %s1129_s1, %s696_s9  ;;  %p703_p0 = scmp.lt.s32.totalorder %s696_s9, %s696_s9 }
  0x35   : > { %s1139_s26 = scalar_select %p989_p4, 1, 0 }
  0x36   : > { %p699_p12 = pnand %p697_p6, %p670_p5 }
  0x38   : > { %p700_p13 = pneg %p699_p12 }
  0x3a   : > { %p705_p8 = pnand %p703_p0, %p700_p13 }
  0x3c   : > { %708 = shalt.err (!%p705_p8)
}
  0x3d   : > { %s709_s4 = scalar_lea.vmem %s209_s6, 256  ;;  %s716_s15 = scalar_lea.vmem %s209_s6, 512 }
  0x3e   : > { %p710_p9 = scmp.ne.s32.totalorder %s209_s6, %s709_s4  ;;  %p717_p1 = scmp.lt.s32.totalorder %s209_s6, %s209_s6 }
  0x3f   : > { %p718_p3 = scmp.lt.s32.totalorder %s716_s15, %s709_s4 }
  0x40   : > { %p712_p10 = pnand %p710_p9, %p670_p5 }
  0x41   : > { %p719_p7 = por %p718_p3, %p717_p1 }
  0x42   : > { %p713_p11 = pneg %p712_p10 }
  0x44   : > { %p720_p4 = pnand %p719_p7, %p713_p11 }
  0x46   : > { %723 = shalt.err (!%p720_p4)
}
  0x47   : > { %575 = dma.hbm_to_vmem [thread:$0]  (!%p964_p2), %s1129_s1, 256, %s209_s6, [#allocation6], %s862_s20, %s862_s20, %s863_s21  }
  0x48   : > { %p1140_p6 = scmp.ne.s32.totalorder %s1139_s26, 0 }
  0x49   : > { %s222_s30 = sand.u32 (!%p1140_p6), 1, %s847_s16   ;;  %p1141_p5 = scmp.ne.s32.totalorder (!%p1140_p6), %s1135_s24, 0 }
  0x4a   : > { %220 = sbr.rel (%p1140_p6) target bundleno = 154 (0x9a), region = 28  ;;  %s550_s7 = sshll.u32 (!%p1140_p6), %s222_s30, 4 }
  0x4b   : > { %s223_s8 = scalar_lea.sflag (!%p1140_p6), [#allocation3], %s222_s30  ;;  %s226_s9 = scalar_lea.vmem (!%p1140_p6), [#allocation2], %s550_s7 }
  0x4f   : > { %813 = dma.done.wait (%p1141_p5), %s223_s8, 256  }
  0x50   : > { %815 = vsyncadd (%p1141_p5), %s223_s8, 4294967040  ;;  %s232_s5 = scalar_lea.sflag [#allocation6], %s222_s30  ;;  %s235_s10 = scalar_lea.vmem [#allocation5], %s550_s7 }
  0x51   : > { %817 = dma.done.wait (%p1141_p5), %s232_s5, 256  }
  0x52   : > { %819 = vsyncadd (%p1141_p5), %s232_s5, 4294967040  ;;  %s1022_s20 = sand.u32 1, %s835_s13   ;;  %v285_v0 = vlaneseq  ;;  %s554_s21 = sshll.u32 %s851_s17, 3  ;;  %v865_v3 = vmov 0.0   ;;  %v280_v7 = vld [vmem:[%s226_s9] sm:$0xff]  ;;  %v281_v8 = vld [vmem:[%s226_s9 + $0x8] sm:$0xff] }
  0x53   : > { %s552_s26 = sshll.u32 %s1022_s20, 1  ;;  %v290_v1 = vstv %s554_s21  ;;  %v297_v10 = vsub.f32 1.0, %v280_v7  ;;  %v298_v11 = vsub.f32 1.0, %v281_v8  ;;  %v303_v12 = vadd.f32 1e-10, %v280_v7  ;;  %v282_v14 = vld [vmem:[%s235_s10] sm:$0xff] }
  0x54   : > { %v286_v2 = vshrl.u32 %v285_v0, 7  ;;  %s1026_s6 = scalar_lea.vmem [#allocation7], %s552_s26  ;;  %s1029_s11 = scalar_lea.vmem [#allocation8], %s552_s26  ;;  %v288_v4 = vand.u32 127, %v285_v0  ;;  %v304_v13 = vadd.f32 1e-10, %v281_v8  ;;  %v315_v34 = vmul.f32 %v280_v7, %v280_v7 }
  0x55   : > { %278 = vst [vmem:[%s1026_s6] sm:$0x3] %v865_v3  ;;  %279 = vst [vmem:[%s1029_s11] sm:$0x3] %v865_v3  ;;  %660 = vlog2.f32 %v303_v12  ;;  %v283_v15 = vld [vmem:[%s235_s10 + $0x8] sm:$0xff]  ;;  %v319_v16 = vadd.f32 1e-10, %v297_v10  ;;  %vm331_vm1 = vcmp.ge.f32.partialorder %v282_v14, 1.0  ;;  %v299_v28 = vmul.f32 %v297_v10, %v297_v10 }
  0x56   : > { %v291_v5 = vadd.s32 %v290_v1, %v286_v2  ;;  %662 = vlog2.f32 %v304_v13  ;;  %v320_v17 = vadd.f32 1e-10, %v298_v11  ;;  %vm332_vm2 = vcmp.ge.f32.partialorder %v283_v15, 1.0  ;;  %s557_s24 = sshll.u32 %s851_s17, 5  ;;  %s408_s4 = sshll.u32 %s1029_s11, 4  ;;  %s1050_s4 = int_to_ptr.vmem [resolvable:$true] %s408_s4 }
  0x57   : > { %664 = vlog2.f32 %v319_v16  ;;  %v311_v23 = vsub.f32 1.0, %v282_v14  ;;  %v312_v25 = vsub.f32 1.0, %v283_v15  ;;  %v295_v27 = vsub.f32 0.0, %v282_v14  ;;  %s1048_s25 = scalar_lea.hbm %s1131_s3, %s557_s24  ;;  %s382_s30 = scalar_lea.sflag [#allocation9], %s1022_s20 }
  0x58   : > { %v292_v6 = vmul.u32 128, %v291_v5  ;;  %666 = vlog2.f32 %v320_v17  ;;  %v296_v30 = vsub.f32 0.0, %v283_v15  ;;  %v300_v31 = vmul.f32 %v298_v11, %v298_v11  ;;  %s724_s7 = scalar_lea.vmem %s1050_s4, 32  ;;  %p1142_p4 = scmp.ne.s32.totalorder %s1136_s28, 0 }
  0x59   : > { %v313_v33 = vsub.f32 0.0, %v311_v23  ;;  %v314_v37 = vsub.f32 0.0, %v312_v25  ;;  %v316_v38 = vmul.f32 %v281_v8, %v281_v8  ;;  %v301_v41 = vmul.f32 %v299_v28, %v295_v27  ;;  %p725_p2 = scmp.ne.s32.totalorder %s1050_s4, %s724_s7  ;;  %s866_s8 = smov [#allocation8]  }
  0x5a   : > { %v1032_v9 = vadd.s32 %v292_v6, %v288_v4  ;;  %v302_v44 = vmul.f32 %v300_v31, %v296_v30  ;;  %vm352_vm5 = vcmask 1041409   ;;  %s728_s9 = sshll.u32 %s866_s8, 4  ;;  %s729_s9 = int_to_ptr.vmem [resolvable:$false] %s728_s9 }
  0x5b   : > { %v317_v47 = vmul.f32 %v315_v34, %v313_v33  ;;  %v318_v51 = vmul.f32 %v316_v38, %v314_v37  ;;  %p726_p12 = pnand %p725_p2, %p1142_p4  ;;  %s730_s5 = scalar_lea.vmem %s729_s9, 64 }
  0x5c   : > { %vm294_vm0 = vcmp.lt.s32.totalorder %v1032_v9, 1024  ;;  %v357_v48 = vld [vmem:[%s1029_s11] sm:$0x3]  ;;  %p731_p0 = scmp.lt.s32.totalorder %s1050_s4, %s729_s9  ;;  %p732_p8 = scmp.lt.s32.totalorder %s730_s5, %s724_s7 }
  0x5d   : > { %vm333_vm3 = vmand %vm294_vm0, %vm331_vm1  ;;  %p727_p13 = pneg %p726_p12 }
  0x5e   : > { %vm334_vm4 = vmand %vm294_vm0, %vm332_vm2  ;;  %v335_v18 = vsel %vm333_vm3, 1.0, %v865_v3  ;;  %p733_p9 = por %p732_p8, %p731_p0 }
  0x5f   : > { %v336_v19 = vsel %vm334_vm4, 1.0, %v865_v3  ;;  %v358_v20 = vrot.slane %v335_v18, 4 }
  0x60   : > { %v364_v21 = vrot.slane %v336_v19, 4  ;;  %p734_p10 = pnand %p733_p9, %p727_p13 }
  0x61   : > { %v359_v22 = vadd.f32 %v358_v20, %v335_v18 }
  0x62   : > { %v365_v24 = vadd.f32 %v364_v21, %v336_v19  ;;  %v661_v36 = vpop.eup %660 }
  0x63   : > { %v360_v26 = vrot.slane %v359_v22, 2  ;;  %v663_v40 = vpop.eup %662  ;;  %v306_v42 = vmul.f32 0.6931472, %v661_v36 }
  0x64   : > { %v366_v29 = vrot.slane %v365_v24, 2  ;;  %v308_v45 = vmul.f32 0.6931472, %v663_v40  ;;  %v665_v50 = vpop.eup %664 }
  0x65   : > { %v361_v32 = vadd.f32 %v360_v26, %v359_v22  ;;  %v667_v52 = vpop.eup %666  ;;  %v309_v53 = vmul.f32 %v306_v42, %v301_v41  ;;  %v322_v54 = vmul.f32 0.6931472, %v665_v50 }
  0x66   : > { %v367_v35 = vadd.f32 %v366_v29, %v365_v24  ;;  %v310_v56 = vmul.f32 %v308_v45, %v302_v44  ;;  %v324_v57 = vmul.f32 0.6931472, %v667_v52 }
  0x67   : > { %v362_v39 = vrot.slane %v361_v32, 1  ;;  %v325_v59 = vmul.f32 %v322_v54, %v317_v47 }
  0x68   : > { %v368_v43 = vrot.slane %v367_v35, 1  ;;  %v326_v60 = vmul.f32 %v324_v57, %v318_v51 }
  0x69   : > { %v363_v46 = vadd.f32 %v362_v39, %v361_v32  ;;  %v327_v61 = vadd.f32 %v325_v59, %v309_v53 }
  0x6a   : > { %v369_v49 = vadd.f32 %v368_v43, %v367_v35 }
  0x6c   : > { %v372_v55 = vsel %vm352_vm5, %v369_v49, %v363_v46 }
  0x6d   : > { %v374_v58 = vadd.f32 %v372_v55, %v357_v48 }
  0x6f   : > { %375 = vst [vmem:[%s1029_s11] sm:$0x3] %v374_v58 }
  0x70   : > { %737 = shalt.err (!%p734_p10)
}
  0x71   : > { %s738_s10 = scalar_lea.hbm %s1048_s25, 32  ;;  %s742_s11 = scalar_lea.hbm %s1131_s3, 64 }
  0x72   : > { %p739_p11 = scmp.ne.s32.totalorder %s1048_s25, %s738_s10  ;;  %p743_p7 = scmp.lt.s32.totalorder %s1048_s25, %s1131_s3 }
  0x73   : > { %p744_p6 = scmp.lt.s32.totalorder %s742_s11, %s738_s10 }
  0x74   : > { %p740_p1 = pnand %p739_p11, %p1142_p4 }
  0x75   : > { %p745_p5 = por %p744_p6, %p743_p7 }
  0x76   : > { %p741_p3 = pneg %p740_p1 }
  0x78   : > { %p746_p2 = pnand %p745_p5, %p741_p3 }
  0x7a   : > { %749 = shalt.err (!%p746_p2)
}
  0x7b   : > { %566 = dma.vmem_to_hbm [thread:$0]  (%p1142_p4), %s1050_s4, 32, %s1048_s25, %s382_s30   ;;  %v328_v62 = vadd.f32 %v326_v60, %v310_v56  ;;  %v329_v63 = vsel %vm294_vm0, %v327_v61, 0.0  ;;  %v337_v13 = vld [vmem:[%s1026_s6] sm:$0x3] }
  0x7c   : > { %v338_v1 = vrot.slane %v329_v63, 4  ;;  %s395_s4 = sshll.u32 %s1026_s6, 4  ;;  %s393_s7 = scalar_lea.hbm %s1130_s2, %s557_s24  ;;  %s396_s4 = int_to_ptr.vmem [resolvable:$true] %s395_s4 }
  0x7d   : > { %v330_v0 = vsel %vm294_vm0, %v328_v62, 0.0  ;;  %s377_s8 = scalar_lea.sflag [#allocation4], %s1022_s20  ;;  %s750_s9 = scalar_lea.vmem %s396_s4, 32 }
  0x7e   : > { %v344_v2 = vrot.slane %v330_v0, 4  ;;  %v339_v3 = vadd.f32 %v338_v1, %v329_v63  ;;  %p751_p12 = scmp.ne.s32.totalorder %s396_s4, %s750_s9  ;;  %s867_s5 = smov [#allocation7]  }
  0x7f   : > { %s754_s10 = sshll.u32 %s867_s5, 4  ;;  %s755_s10 = int_to_ptr.vmem [resolvable:$false] %s754_s10 }
  0x80   : > { %v345_v4 = vadd.f32 %v344_v2, %v330_v0  ;;  %v340_v5 = vrot.slane %v339_v3, 2  ;;  %p752_p13 = pnand %p751_p12, %p1142_p4  ;;  %s756_s21 = scalar_lea.vmem %s755_s10, 64 }
  0x81   : > { %p757_p8 = scmp.lt.s32.totalorder %s396_s4, %s755_s10  ;;  %p758_p9 = scmp.lt.s32.totalorder %s756_s21, %s750_s9 }
  0x82   : > { %v346_v6 = vrot.slane %v345_v4, 2  ;;  %v341_v7 = vadd.f32 %v340_v5, %v339_v3  ;;  %p753_p0 = pneg %p752_p13 }
  0x83   : > { %p759_p10 = por %p758_p9, %p757_p8 }
  0x84   : > { %v347_v8 = vadd.f32 %v346_v6, %v345_v4  ;;  %v342_v10 = vrot.slane %v341_v7, 1 }
  0x85   : > { %p760_p11 = pnand %p759_p10, %p753_p0 }
  0x86   : > { %v348_v11 = vrot.slane %v347_v8, 1  ;;  %v343_v12 = vadd.f32 %v342_v10, %v341_v7 }
  0x88   : > { %v349_v14 = vadd.f32 %v348_v11, %v347_v8 }
  0x8a   : > { %v353_v9 = vsel %vm352_vm5, %v349_v14, %v343_v12 }
  0x8b   : > { %v355_v15 = vadd.f32 %v353_v9, %v337_v13 }
  0x8d   : > { %356 = vst [vmem:[%s1026_s6] sm:$0x3] %v355_v15 }
  0x8e   : > { %763 = shalt.err (!%p760_p11)
}
  0x8f   : > { %s764_s17 = scalar_lea.hbm %s393_s7, 32  ;;  %s768_s24 = scalar_lea.hbm %s1130_s2, 64 }
  0x90   : > { %p765_p1 = scmp.ne.s32.totalorder %s393_s7, %s764_s17  ;;  %p769_p6 = scmp.lt.s32.totalorder %s393_s7, %s1130_s2 }
  0x91   : > { %p770_p5 = scmp.lt.s32.totalorder %s768_s24, %s764_s17 }
  0x92   : > { %p766_p3 = pnand %p765_p1, %p1142_p4 }
  0x93   : > { %p771_p2 = por %p770_p5, %p769_p6 }
  0x94   : > { %p767_p7 = pneg %p766_p3 }
  0x96   : > { %p772_p12 = pnand %p771_p2, %p767_p7 }
  0x98   : > { %775 = shalt.err (!%p772_p12)
}
  0x99   : > { %565 = dma.vmem_to_hbm [thread:$0]  (%p1142_p4), %s396_s4, 32, %s393_s7, %s377_s8  }
  0x9a PF: > { %s420_s15 = sand.u32 1, %s831_s12   ;;  %p1143_p13 = scmp.ne.s32.totalorder %s1137_s29, 0 }
  0x9b   : > { %p1144_p0 = scmp.ge.s32.totalorder %s859_s19, 2  ;;  %s421_s23 = scalar_lea.sflag [#allocation4], %s420_s15 }
  0x9d   : > { %p577_p8 = pnand %p1144_p0, %p1143_p13 }
  0x9f   : > { %p578_p9 = pneg %p577_p8 }
  0xa1   : > { %821 = dma.done.wait (%p578_p9), %s421_s23, 32  }
  0xa2   : > { %823 = vsyncadd (%p578_p9), %s421_s23, 4294967264  ;;  %s430_s25 = scalar_lea.sflag [#allocation9], %s420_s15 }
  0xa3   : > { %825 = dma.done.wait (%p578_p9), %s430_s25, 32  }
  0xa4   : > { %827 = vsyncadd (%p578_p9), %s430_s25, 4294967264  ;;  %s26_s19 = sadd.s32 1, %s859_s19   ;;  %s1145_s12 = smov %s835_s13 }
  0xa5   : > { %p23_p10 = scmp.ge.s32.totalorder %s26_s19, 4   ;;  %s1146_s13 = smov %s839_s14 }
  0xa6   : > { %s1147_s14 = smov %s946_s27  ;;  %s1148_s15 = smov %s847_s16 }
  0xa7   : > { %s1118_s16 = smov 0   ;;  %s1149_s17 = smov %s855_s18 }
  0xa8   : > { %s1150_s18 = smov %s1152_s22  ;;  %25 = sbr.rel (!%p23_p10) target bundleno = 11 (0xb), region = 107 }
  0xad   :  { %435 = vsyncpa [#allocation3], 1 }
  0xae   :  { %437 = vsyncpa [#allocation3 + $0x1], 1 }
  0xaf   :  { %438 = vsyncpa [#allocation6], 1 }
  0xb0   :  { %440 = vsyncpa [#allocation6 + $0x1], 1 }
  0xb1   :  { %441 = vsyncpa [#allocation4], 1 }
  0xb2   :  { %443 = vsyncpa [#allocation4 + $0x1], 1 }
  0xb3   :  { %444 = vsyncpa [#allocation9], 1 }
  0xb4   :  { %446 = vsyncpa [#allocation9 + $0x1], 1 }

</bundles_post_ra>
